<compile_context>
chip_gen: v6e
topology: v6e:2x2x1
jax: 0.10.0
libtpu: 0.0.40
codegen_flags: <defaults>
</compile_context>

<pallas_src>
import functools

import jax
import jax.numpy as jnp
from jax.experimental import pallas as pl
from jax.experimental.pallas import tpu as pltpu

_LANE = 128
# Budget for the double-buffered input blocks; conservative so the same tile
# sizing is safe on v5e/v6e (128 MiB VMEM) and v7x (64 MiB physical, 32 MiB
# scoped default).
_VMEM_INPUT_BUDGET_BYTES = 16 * 1024 * 1024


def _rastrigin_kernel(pos_ref, out_ref):
    # pos_ref: (D, TILE_N) block in VMEM -- candidates on the lane axis.
    # out_ref: (1, TILE_N)  lane-dense output block (unmasked vst).
    x = pos_ref[...].astype(jnp.float32)   # upcast (free-ish; supports bf16 in)
    d = x.shape[0]
    two_pi = jnp.float32(2.0 * jnp.pi)
    # VPU: x*x, mul, sub;  EUP: cos (own bundle slot);  XLU: sublane reduce.
    terms = x * x - 10.0 * jnp.cos(two_pi * x)
    out_ref[...] = jnp.sum(terms, axis=0, keepdims=True) + jnp.float32(10.0 * d)


@functools.partial(jax.jit, static_argnames=("tile_n",))
def obj_func_forward(position: jax.Array, *, tile_n: int = 2048) -> jax.Array:
    """Pallas equivalent of ObjFuncModule(rastrigin).forward(position).

    position: (N, D) float32 or bfloat16 -- N candidate positions, D dims.
    returns:  (N,) float32 objective values.
    """
    n, d = position.shape

    # ---- tile sizing -------------------------------------------------------
    n_pad_min = pl.cdiv(n, _LANE) * _LANE
    itemsize = jnp.dtype(position.dtype).itemsize
    # Cap tile so 2 (double-buffer) x D x tile x itemsize stays in budget.
    max_tile = _VMEM_INPUT_BUDGET_BYTES // max(1, 2 * d * itemsize)
    max_tile = max(_LANE, (max_tile // _LANE) * _LANE)
    tile = max(_LANE, (min(tile_n, max_tile, n_pad_min) // _LANE) * _LANE)

    n_pad = pl.cdiv(n, tile) * tile
    grid = (n_pad // tile,)  # for large N this stays >= 2, so v7x's two TCs
                             # can both work on the "parallel" axis.

    # Layout plumbing (wrapper side, per review): transpose to (D, N) and
    # zero-pad N so the kernel sees full 128-lane vregs; padded columns are
    # sliced off below.
    # TODO(synk): callers that already hold a (D, N) layout could skip this
    # wrapper transpose and feed the kernel directly.
    pos_t = jnp.transpose(position)
    if n_pad != n:
        pos_t = jnp.pad(pos_t, ((0, 0), (0, n_pad - n)))

    out = pl.pallas_call(
        _rastrigin_kernel,
        out_shape=jax.ShapeDtypeStruct((1, n_pad), jnp.float32),
        grid=grid,
        in_specs=[pl.BlockSpec((d, tile), lambda i: (0, i))],
        out_specs=pl.BlockSpec((1, tile), lambda i: (0, i)),
        compiler_params=pltpu.CompilerParams(
            dimension_semantics=("parallel",),
        ),
    )(pos_t)
    return out[0, :n]  # (N,)


def _rastrigin_ref(position: jnp.ndarray) -> jnp.ndarray:
    d = position.shape[-1]
    x = position.astype(jnp.float32)
    return 10.0 * d + jnp.sum(x * x - 10.0 * jnp.cos(2.0 * jnp.pi * x), axis=-1)


if __name__ == "__main__":
    key = jax.random.PRNGKey(0)
    # small shapes: 8 candidate positions, 32-dimensional search space
    N, D = 8, 32
    position = jax.random.uniform(
        key, (N, D), dtype=jnp.float32, minval=-5.12, maxval=5.12
    )

    result = obj_func_forward(position)
    result = jax.block_until_ready(result)

    expected = _rastrigin_ref(position)
    assert result.shape == (N,)
    assert jnp.allclose(result, expected, rtol=1e-5, atol=1e-4), (
        f"mismatch: {result} vs {expected}"
    )

    # also exercise the ragged / multi-block path with a larger N
    N2, D2 = 1000, 32
    position2 = jax.random.uniform(
        jax.random.PRNGKey(1), (N2, D2), dtype=jnp.float32, minval=-5.12, maxval=5.12
    )
    result2 = jax.block_until_ready(obj_func_forward(position2, tile_n=512))
    expected2 = _rastrigin_ref(position2)
    assert result2.shape == (N2,)
    assert jnp.allclose(result2, expected2, rtol=1e-5, atol=1e-3), "mismatch (large)"

    print("KERNEL_OK")
</pallas_src>

<mosaic_0001>
module attributes {stable_mosaic.version = 11 : i64} {
  func.func @_rastrigin_kernel(%arg0: i32, %arg1: memref<32x128xf32, #tpu.memory_space<vmem>>, %arg2: memref<1x128xf32, #tpu.memory_space<vmem>>) attributes {dimension_semantics = [#tpu.dimension_semantics<parallel>], iteration_bounds = array<i64: 1>, scalar_prefetch = 0 : i64, scratch_operands = 0 : i64, tpu.core_type = #tpu.core_type<tc>, window_params = [{transform_indices = @transform_0, window_bounds = array<i64: 32, 128>}, {transform_indices = @transform_1, window_bounds = array<i64: 1, 128>}]} {
    %c0 = arith.constant 0 : index
    %c0_0 = arith.constant 0 : index
    %0 = vector.load %arg1[%c0, %c0_0] : memref<32x128xf32, #tpu.memory_space<vmem>>, vector<32x128xf32>
    %1 = arith.mulf %0, %0 : vector<32x128xf32>
    %cst = arith.constant 6.28318548 : f32
    %2 = vector.broadcast %cst : f32 to vector<32x128xf32>
    %3 = arith.mulf %2, %0 : vector<32x128xf32>
    %4 = math.cos %3 : vector<32x128xf32>
    %cst_1 = arith.constant 1.000000e+01 : f32
    %5 = vector.broadcast %cst_1 : f32 to vector<32x128xf32>
    %6 = arith.mulf %5, %4 : vector<32x128xf32>
    %7 = arith.subf %1, %6 : vector<32x128xf32>
    %cst_2 = arith.constant dense<0.000000e+00> : vector<128xf32>
    %8 = vector.multi_reduction <add>, %7, %cst_2 [0] : vector<32x128xf32> to vector<128xf32>
    %9 = vector.shape_cast %8 : vector<128xf32> to vector<1x128xf32>
    %cst_3 = arith.constant 3.200000e+02 : f32
    %10 = vector.broadcast %cst_3 : f32 to vector<1x128xf32>
    %11 = arith.addf %9, %10 : vector<1x128xf32>
    %c0_4 = arith.constant 0 : index
    %c0_5 = arith.constant 0 : index
    %12 = vector.load %arg2[%c0_4, %c0_5] : memref<1x128xf32, #tpu.memory_space<vmem>>, vector<1x128xf32>
    tpu.vector_store %arg2[%c0_4, %c0_5], %11 {strides = array<i32>} : memref<1x128xf32, #tpu.memory_space<vmem>>, vector<1x128xf32>,
    return
  }
  func.func @transform_0(%arg0: i32) -> (i32, i32) {
    %c0_i32 = arith.constant 0 : i32
    %c0_i32_0 = arith.constant 0 : i32
    return %c0_i32, %arg0 : i32, i32
  }
  func.func @transform_1(%arg0: i32) -> (i32, i32) {
    %c0_i32 = arith.constant 0 : i32
    %c0_i32_0 = arith.constant 0 : i32
    return %c0_i32, %arg0 : i32, i32
  }
}

</mosaic_0001>

<bundles_post_ra>
// kernel: obj_func_forward.1
= control target key start
LH: loop header
LB: loop body
LE: loop exit
PB: predicated region body
PF: predicated region fallthrough
CT: control target
= control target key end

     0   :  { %v509_v30 = vmov 683565275   ;;  %v510_v32 = vmov 2475754826   ;;  %v511_v34 = vmov 2131351028   ;;  %s825_s0 = inlined_call_operand.vmem [shape: f32[32,128], index: 0, kind: input, shape index: {}]   ;;  %s826_s1 = inlined_call_operand.vmem [shape: f32[1,128], index: 1, kind: output, shape index: {}]  }
   0x1   :  { %v528_v0 = vld [vmem:[%s825_s0] sm:$0xff]  ;;  %v533_v1 = vld [vmem:[%s825_s0 + $0x8] sm:$0xff]  ;;  %v538_v2 = vld [vmem:[%s825_s0 + $0x10] sm:$0xff]  ;;  %v512_v36 = vmov 2102212464  }
   0x2   :  { %v541_v3 = vmul.f32 6.2831855, %v528_v0  ;;  %v544_v4 = vmul.f32 6.2831855, %v533_v1  ;;  %v549_v7 = vmul.f32 6.2831855, %v538_v2 }
   0x3   :  { %v513_v38 = vmov 920167782   ;;  %v514_v46 = vmov 1326507024  }
   0x4   :  { %v20_v5 = vand.u32 2147483647, %v541_v3  ;;  %v23_v6 = vand.u32 2139095040, %v541_v3  ;;  %v123_v8 = vand.u32 2147483647, %v544_v4  ;;  %v126_v10 = vand.u32 2139095040, %v544_v4 }
   0x5   :  { %v229_v15 = vand.u32 2139095040, %v549_v7 }
   0x6   :  { %v24_v9 = vshrl.u32 %v23_v6, 23  ;;  %v27_v11 = vand.u32 8388607, %v20_v5  ;;  %v130_v12 = vand.u32 8388607, %v123_v8  ;;  %v127_v14 = vshrl.u32 %v126_v10, 23 }
   0x7   :  { %v230_v20 = vshrl.u32 %v229_v15, 23 }
   0x8   :  { %v455_v13 = vadd.s32 4294967169, %v24_v9  ;;  %v459_v17 = vadd.s32 4294967169, %v127_v14  ;;  %v28_v18 = vor.u32 8388608, %v27_v11  ;;  %v131_v19 = vor.u32 8388608, %v130_v12 }
   0x9   :  { %v463_v23 = vadd.s32 4294967169, %v230_v20 }
   0xa   :  { %v30_v16 = vadd.s32 1, %v455_v13  ;;  %v133_v21 = vadd.s32 1, %v459_v17  ;;  %v558_v26 = vshll.u32 %v28_v18, 8  ;;  %v560_v28 = vshll.u32 %v131_v19, 8 }
   0xb   :  { %v567_v40 = vadd.s32 1, %v463_v23 }
   0xc   :  { %vm31_vm0 = vcmp.gt.s32.totalorder %v30_v16, 0  ;;  %vm134_vm1 = vcmp.gt.s32.totalorder %v133_v21, 0 }
   0xd   :  { %v32_v22 = vsel %vm31_vm0, %v30_v16, 0  ;;  %v135_v27 = vsel %vm134_vm1, %v133_v21, 0  ;;  %vm237_vm8 = vcmp.gt.s32.totalorder %v567_v40, 0 }
   0xe   :  { %v33_v24 = vshrl.u32 %v32_v22, 5  ;;  %v34_v25 = vand.u32 31, %v32_v22  ;;  %v136_v53 = vshrl.u32 %v135_v27, 5  ;;  %v137_v54 = vand.u32 31, %v135_v27 }
  0x10   :  { %v35_v29 = vsub.s32 32, %v34_v25  ;;  %v37_v31 = vshll.u32 %v509_v30, %v34_v25  ;;  %v40_v33 = vshll.u32 %v510_v32, %v34_v25  ;;  %v43_v35 = vshll.u32 %v511_v34, %v34_v25 }
  0x11   :  { %v46_v37 = vshll.u32 %v512_v36, %v34_v25  ;;  %v49_v39 = vshll.u32 %v513_v38, %v34_v25  ;;  %vm52_vm2 = vcmp.lt.s32.totalorder %v33_v24, 1  ;;  %vm53_vm3 = vcmp.lt.s32.totalorder %v33_v24, 2 }
  0x12   :  { %v36_v41 = vshrl.u32 %v509_v30, %v35_v29  ;;  %v38_v42 = vshrl.u32 %v510_v32, %v35_v29  ;;  %v41_v43 = vshrl.u32 %v511_v34, %v35_v29  ;;  %v44_v44 = vshrl.u32 %v512_v36, %v35_v29 }
  0x13   :  { %v47_v45 = vshrl.u32 %v513_v38, %v35_v29  ;;  %v50_v47 = vshrl.u32 %v514_v46, %v35_v29  ;;  %vm54_vm4 = vcmp.lt.s32.totalorder %v33_v24, 3  ;;  %vm55_vm5 = vcmp.lt.s32.totalorder %v33_v24, 4 }
  0x14   :  { %v39_v48 = vor.u32 %v38_v42, %v37_v31  ;;  %v42_v49 = vor.u32 %v41_v43, %v40_v33  ;;  %v45_v50 = vor.u32 %v44_v44, %v43_v35  ;;  %v138_v62 = vsub.s32 32, %v137_v54 }
  0x15   :  { %v48_v51 = vor.u32 %v47_v45, %v46_v37  ;;  %v51_v52 = vor.u32 %v50_v47, %v49_v39  ;;  %v140_v10 = vshll.u32 %v509_v30, %v137_v54  ;;  %v143_v20 = vshll.u32 %v510_v32, %v137_v54  ;;  %v612_v37 = vld [vmem:[%s825_s0 + $0x18] sm:$0xff] }
  0x16   :  { %v56_v55 = vsel %vm52_vm2, %v36_v41, %v39_v48  ;;  %v57_v56 = vsel %vm55_vm5, %v45_v50, 2102212464  ;;  %v60_v57 = vsel %vm52_vm2, %v39_v48, %v42_v49  ;;  %v64_v58 = vsel %vm52_vm2, %v42_v49, %v45_v50 }
  0x17   :  { %v58_v59 = vsel %vm54_vm4, %v42_v49, %v57_v56  ;;  %v61_v60 = vsel %vm55_vm5, %v48_v51, 920167782  ;;  %v65_v61 = vsel %vm55_vm5, %v51_v52, 1326507024  ;;  %v139_v14 = vshrl.u32 %v509_v30, %v138_v62 }
  0x18   :  { %v59_v63 = vsel %vm53_vm3, %v56_v55, %v58_v59  ;;  %v62_v6 = vsel %vm54_vm4, %v45_v50, %v61_v60  ;;  %v66_v9 = vsel %vm54_vm4, %v48_v51, %v65_v61  ;;  %v141_v19 = vshrl.u32 %v510_v32, %v138_v62 }
  0x19   :  { %v63_v11 = vsel %vm53_vm3, %v60_v57, %v62_v6  ;;  %v67_v12 = vsel %vm53_vm3, %v64_v58, %v66_v9  ;;  %v75_v13 = vmul.u32 %v558_v26, %v59_v63  ;;  %v144_v21 = vshrl.u32 %v511_v34, %v138_v62 }
  0x1a   :  { %v588_v15 = vmul.u32.u64.low %v558_v26, %v67_v12  ;;  %v589_v16 = vmul.u32.u64.high %v558_v26, %v67_v12, %v588_v15  ;;  %v592_v17 = vmul.u32.u64.low %v558_v26, %v63_v11  ;;  %v593_v18 = vmul.u32.u64.high %v558_v26, %v63_v11, %v592_v17 }
  0x1b   :  { %v146_v22 = vshll.u32 %v511_v34, %v137_v54  ;;  %v147_v23 = vshrl.u32 %v512_v36, %v138_v62  ;;  %v149_v24 = vshll.u32 %v512_v36, %v137_v54  ;;  %v150_v25 = vshrl.u32 %v513_v38, %v138_v62 }
  0x1c   :  { %v152_v27 = vshll.u32 %v513_v38, %v137_v54  ;;  %v142_v29 = vor.u32 %v141_v19, %v140_v10  ;;  %v145_v26 = vor.u32 %v144_v21, %v143_v20  ;;  %v153_v31 = vshrl.u32 %v514_v46, %v138_v62 }
  0x1d   :  { %vm155_vm6 = vcmp.lt.s32.totalorder %v136_v53, 1  ;;  %vm77_vm7 = vc.u32 %v589_v16, %v592_v17  ;;  %v78_v33 = vadd.s32 1, %v593_v18  ;;  %v148_v35 = vor.u32 %v147_v23, %v146_v22 }
  0x1e   :  { %v151_v39 = vor.u32 %v150_v25, %v149_v24  ;;  %v154_v41 = vor.u32 %v153_v31, %v152_v27  ;;  %vm156_vm9 = vcmp.lt.s32.totalorder %v136_v53, 2  ;;  %vm157_vm10 = vcmp.lt.s32.totalorder %v136_v53, 3 }
  0x1f   :  { %v79_v42 = vsel %vm77_vm7, %v78_v33, %v593_v18  ;;  %vm158_vm11 = vcmp.lt.s32.totalorder %v136_v53, 4  ;;  %v159_v43 = vsel %vm155_vm6, %v139_v14, %v142_v29  ;;  %v163_v44 = vsel %vm155_vm6, %v142_v29, %v145_v26 }
  0x20   :  { %v80_v45 = vadd.s32 %v79_v42, %v75_v13  ;;  %v160_v47 = vsel %vm158_vm11, %v148_v35, 2102212464  ;;  %v164_v48 = vsel %vm158_vm11, %v151_v39, 920167782  ;;  %v167_v49 = vsel %vm155_vm6, %v145_v26, %v148_v35 }
  0x21   :  { %v619_v50 = vmul.f32 6.2831855, %v612_v37  ;;  %v161_v51 = vsel %vm157_vm10, %v145_v26, %v160_v47  ;;  %v165_v52 = vsel %vm157_vm10, %v148_v35, %v164_v48  ;;  %v168_v54 = vsel %vm158_vm11, %v154_v41, 1326507024 }
  0x22   :  { %v81_v55 = vadd.s32 536870912, %v80_v45  ;;  %v166_v56 = vsel %vm156_vm9, %v163_v44, %v165_v52  ;;  %v169_v57 = vsel %vm157_vm10, %v151_v39, %v168_v54  ;;  %v238_v58 = vsel %vm237_vm8, %v567_v40, 0 }
  0x23   :  { %v162_v59 = vsel %vm156_vm9, %v159_v43, %v161_v51  ;;  %v170_v60 = vsel %vm156_vm9, %v167_v49, %v169_v57  ;;  %v628_v61 = vmul.u32.u64.low %v560_v28, %v166_v56  ;;  %v629_v62 = vmul.u32.u64.high %v560_v28, %v166_v56, %v628_v61 }
  0x24   :  { %v632_v63 = vshrl.u32 %v81_v55, 30  ;;  %v635_v6 = vmul.u32.u64.low %v560_v28, %v170_v60  ;;  %v636_v9 = vmul.u32.u64.high %v560_v28, %v170_v60, %v635_v6  ;;  %v226_v10 = vand.u32 2147483647, %v549_v7 }
  0x25   :  { %v240_v11 = vand.u32 31, %v238_v58  ;;  %v178_v12 = vmul.u32 %v560_v28, %v162_v59  ;;  %v181_v53 = vadd.s32 1, %v629_v62  ;;  %v332_v18 = vand.u32 2139095040, %v619_v50 }
  0x26   :  { %v83_v40 = vshll.u32 %v632_v63, 30  ;;  %vm180_vm12 = vc.u32 %v636_v9, %v628_v61  ;;  %v233_v15 = vand.u32 8388607, %v226_v10  ;;  %v239_v23 = vshrl.u32 %v238_v58, 5 }
  0x27   :  { %v241_v13 = vsub.s32 32, %v240_v11  ;;  %v182_v19 = vsel %vm180_vm12, %v181_v53, %v629_v62  ;;  %v243_v20 = vshll.u32 %v509_v30, %v240_v11  ;;  %v246_v24 = vshll.u32 %v510_v32, %v240_v11 }
  0x28   :  { %v642_v14 = vsub.s32 %v80_v45, %v83_v40  ;;  %v183_v22 = vadd.s32 %v182_v19, %v178_v12  ;;  %v249_v27 = vshll.u32 %v511_v34, %v240_v11  ;;  %v252_v26 = vshll.u32 %v512_v36, %v240_v11 }
  0x29   :  { %v244_v21 = vshrl.u32 %v510_v32, %v241_v13  ;;  %v247_v25 = vshrl.u32 %v511_v34, %v241_v13  ;;  %v250_v29 = vshrl.u32 %v512_v36, %v241_v13  ;;  %v234_v33 = vor.u32 8388608, %v233_v15 }
  0x2a   :  { %v86_v28 = vsub.s32 0, %v642_v14  ;;  %v329_v35 = vand.u32 2147483647, %v619_v50  ;;  %v333_v39 = vshrl.u32 %v332_v18, 23  ;;  %v184_v41 = vadd.s32 536870912, %v183_v22 }
  0x2b   :  { %v242_v42 = vshrl.u32 %v509_v30, %v241_v13  ;;  %v245_v43 = vor.u32 %v244_v21, %v243_v20  ;;  %v253_v44 = vshrl.u32 %v513_v38, %v241_v13  ;;  %v251_v47 = vor.u32 %v250_v29, %v249_v27 }
  0x2c   :  { %v456_v31 = vmin.u32 %v86_v28, %v642_v14  ;;  %v255_v48 = vshll.u32 %v513_v38, %v240_v11  ;;  %v256_v49 = vshrl.u32 %v514_v46, %v241_v13  ;;  %v664_v51 = vshrl.u32 %v184_v41, 30 }
  0x2d   :  { %v248_v52 = vor.u32 %v247_v25, %v246_v24  ;;  %v254_v54 = vor.u32 %v253_v44, %v252_v26  ;;  %vm261_vm13 = vcmp.lt.s32.totalorder %v239_v23, 4  ;;  %v76_v55 = vadd.s32 %v592_v17, %v589_v16 }
  0x2e   :  { %v88_v45 = vclz %v456_v31  ;;  %vm258_vm14 = vcmp.lt.s32.totalorder %v239_v23, 1  ;;  %v263_v57 = vsel %vm261_vm13, %v251_v47, 2102212464  ;;  %v186_v58 = vshll.u32 %v664_v51, 30 }
  0x2f   :  { %v257_v59 = vor.u32 %v256_v49, %v255_v48  ;;  %vm260_vm15 = vcmp.lt.s32.totalorder %v239_v23, 3  ;;  %v267_v60 = vsel %vm261_vm13, %v254_v54, 920167782  ;;  %vm259_vm1 = vcmp.lt.s32.totalorder %v239_v23, 2 }
  0x30   :  { %v457_v56 = vadd.s32 4294967294, %v88_v45  ;;  %v262_v62 = vsel %vm258_vm14, %v242_v42, %v245_v43  ;;  %v467_v6 = vadd.s32 4294967169, %v333_v39  ;;  %v672_v40 = vsub.s32 %v183_v22, %v186_v58 }
  0x31   :  { %v264_v16 = vsel %vm260_vm15, %v248_v52, %v263_v57  ;;  %v266_v17 = vsel %vm258_vm14, %v245_v43, %v248_v52  ;;  %v268_v15 = vsel %vm260_vm15, %v251_v47, %v267_v60  ;;  %v270_v19 = vsel %vm258_vm14, %v248_v52, %v251_v47 }
  0x32   :  { %vm458_vm0 = vcmp.lt.s32.totalorder %v457_v56, 0  ;;  %v189_v18 = vsub.s32 0, %v672_v40  ;;  %v271_v20 = vsel %vm261_vm13, %v257_v59, 1326507024  ;;  %v274_v21 = vshll.u32 %v234_v33, 8 }
  0x33   :  { %v91_v11 = vsel %vm458_vm0, 0, %v457_v56  ;;  %v272_v24 = vsel %vm260_vm15, %v254_v54, %v271_v20  ;;  %v339_v25 = vadd.s32 1, %v467_v6  ;;  %v265_v29 = vsel %vm259_vm1, %v262_v62, %v264_v16 }
  0x34   :  { %v92_v12 = vsub.s32 32, %v91_v11  ;;  %v93_v53 = vshll.u32 %v642_v14, %v91_v11  ;;  %v96_v13 = vsub.s32 4294967266, %v91_v11  ;;  %v460_v27 = vmin.u32 %v189_v18, %v672_v40 }
  0x35   :  { %v269_v14 = vsel %vm259_vm1, %v266_v17, %v268_v15  ;;  %v687_v26 = vand.u32 8388607, %v329_v35  ;;  %v273_v41 = vsel %vm259_vm1, %v270_v19, %v272_v24  ;;  %vm340_vm2 = vcmp.gt.s32.totalorder %v339_v25, 0 }
  0x36   :  { %v94_v28 = vshrl.u32 %v76_v55, %v92_v12  ;;  %v97_v22 = vadd.s32 127, %v96_v13  ;;  %v191_v33 = vclz %v460_v27  ;;  %v341_v44 = vsel %vm340_vm2, %v339_v25, 0 }
  0x37   :  { %v690_v42 = vmul.u32.u64.low %v274_v21, %v273_v41  ;;  %v691_v43 = vmul.u32.u64.high %v274_v21, %v273_v41, %v690_v42  ;;  %v693_v48 = vmul.u32.u64.low %v274_v21, %v269_v14  ;;  %v694_v49 = vmul.u32.u64.high %v274_v21, %v269_v14, %v693_v48 }
  0x38   :  { %v95_v31 = vor.u32 %v94_v28, %v93_v53  ;;  %v98_v39 = vshll.u32 %v97_v22, 23  ;;  %v106_v52 = vsub.s32 4, %v632_v63  ;;  %v461_v54 = vadd.s32 4294967294, %v191_v33 }
  0x39   :  { %v343_v55 = vand.u32 31, %v341_v44  ;;  %vm700_vm3 = vcmp.le.f32.partialorder %v20_v5, 0.7853982  ;;  %vm22_vm4 = vcmp.lt.s32.totalorder %v541_v3, 0  ;;  %v179_v57 = vadd.s32 %v628_v61, %v636_v9 }
  0x3a   :  { %v99_v45 = vor.u32 4788187, %v98_v39  ;;  %v102_v47 = vcvt.s32.f32 %v95_v31  ;;  %vm462_vm5 = vcmp.lt.s32.totalorder %v461_v54, 0  ;;  %v281_v58 = vmul.u32 %v274_v21, %v265_v29 }
  0x3b   :  { %vm283_vm6 = vc.u32 %v691_v43, %v693_v48  ;;  %v344_v59 = vsub.s32 32, %v343_v55  ;;  %v194_v62 = vsel %vm462_vm5, 0, %v461_v54  ;;  %v284_v6 = vadd.s32 1, %v694_v49 }
  0x3c   :  { %v100_v56 = vand.u32 2147483647, %v99_v45  ;;  %v337_v5 = vor.u32 8388608, %v687_v26  ;;  %v107_v11 = vsel %vm22_vm4, %v106_v52, %v632_v63  ;;  %v195_v16 = vsub.s32 32, %v194_v62 }
  0x3d   :  { %v196_v17 = vshll.u32 %v672_v40, %v194_v62  ;;  %v199_v61 = vsub.s32 4294967266, %v194_v62  ;;  %v285_v12 = vsel %vm283_vm6, %v284_v6, %v694_v49  ;;  %v346_v53 = vshll.u32 %v509_v30, %v343_v55 }
  0x3e   :  { %v103_v60 = vmul.f32 %v102_v47, %v100_v56  ;;  %v347_v13 = vshrl.u32 %v510_v32, %v344_v59  ;;  %v197_v15 = vshrl.u32 %v179_v57, %v195_v16  ;;  %v286_v19 = vadd.s32 %v285_v12, %v281_v58 }
  0x3f   :  { %v200_v18 = vadd.s32 127, %v199_v61  ;;  %v349_v20 = vshll.u32 %v510_v32, %v343_v55  ;;  %vm125_vm7 = vcmp.lt.s32.totalorder %v544_v4, 0  ;;  %v350_v63 = vshrl.u32 %v511_v34, %v344_v59 }
  0x40   :  { %v104_v9 = vxor.u32 2147483648, %v103_v60  ;;  %v352_v40 = vshll.u32 %v511_v34, %v343_v55  ;;  %v353_v28 = vshrl.u32 %v512_v36, %v344_v59  ;;  %vm730_vm8 = vcmp.le.f32.partialorder %v123_v8, 0.7853982 }
  0x41   :  { %v198_v32 = vor.u32 %v197_v15, %v196_v17  ;;  %v201_v25 = vshll.u32 %v200_v18, 23  ;;  %v287_v27 = vadd.s32 536870912, %v286_v19  ;;  %v109_v29 = vsel %vm700_vm3, 0, %v107_v11 }
  0x42   :  { %v105_v21 = vsel %vm22_vm4, %v104_v9, %v103_v60  ;;  %v342_v34 = vshrl.u32 %v341_v44, 5  ;;  %v355_v14 = vshll.u32 %v512_v36, %v343_v55  ;;  %v348_v41 = vor.u32 %v347_v13, %v346_v53 }
  0x43   :  { %v108_v22 = vsel %vm700_vm3, %v541_v3, %v105_v21  ;;  %v202_v26 = vor.u32 4788187, %v201_v25  ;;  %v205_v31 = vcvt.s32.f32 %v198_v32  ;;  %v737_v39 = vshrl.u32 %v287_v27, 30 }
  0x44   :  { %493 = vcosq.f32 %v108_v22  ;;  %v356_v8 = vshrl.u32 %v513_v38, %v344_v59  ;;  %v358_v33 = vshll.u32 %v513_v38, %v343_v55  ;;  %v359_v42 = vshrl.u32 %v514_v46, %v344_v59 }
  0x45   :  { %495 = vsinq.f32 %v108_v22  ;;  %v203_v45 = vand.u32 2147483647, %v202_v26  ;;  %v289_v47 = vshll.u32 %v737_v39, 30  ;;  %v351_v49 = vor.u32 %v350_v63, %v349_v20 }
  0x46   :  { %v354_v52 = vor.u32 %v353_v28, %v352_v40  ;;  %v357_v44 = vor.u32 %v356_v8, %v355_v14  ;;  %v360_v54 = vor.u32 %v359_v42, %v358_v33  ;;  %vm361_vm9 = vcmp.lt.s32.totalorder %v342_v34, 1 }
  0x47   :  { %vm364_vm10 = vcmp.lt.s32.totalorder %v342_v34, 4  ;;  %v206_v36 = vmul.f32 %v205_v31, %v203_v45  ;;  %v290_v23 = vsub.s32 %v286_v19, %v289_v47  ;;  %v345_v56 = vshrl.u32 %v509_v30, %v344_v59 }
  0x48   :  { %vm363_vm11 = vcmp.lt.s32.totalorder %v342_v34, 3  ;;  %v113_v57 = vand.u32 3, %v109_v29  ;;  %v209_v58 = vsub.s32 4, %v664_v51  ;;  %vm362_vm12 = vcmp.lt.s32.totalorder %v342_v34, 2 }
  0x49   :  { %v370_v38 = vsel %vm364_vm10, %v357_v44, 920167782  ;;  %v207_v46 = vxor.u32 2147483648, %v206_v36  ;;  %v292_v55 = vsub.s32 0, %v290_v23  ;;  %v366_v60 = vsel %vm364_vm10, %v354_v52, 2102212464 }
  0x4a   :  { %v369_v62 = vsel %vm361_vm9, %v348_v41, %v351_v49  ;;  %v371_v6 = vsel %vm363_vm11, %v354_v52, %v370_v38  ;;  %v373_v11 = vsel %vm361_vm9, %v351_v49, %v354_v52  ;;  %v374_v16 = vsel %vm364_vm10, %v360_v54, 1326507024 }
  0x4b   :  { %v377_v17 = vshll.u32 %v337_v5, 8  ;;  %v208_v30 = vsel %vm125_vm7, %v207_v46, %v206_v36  ;;  %v464_v59 = vmin.u32 %v292_v55, %v290_v23  ;;  %v365_v61 = vsel %vm361_vm9, %v345_v56, %v348_v41 }
  0x4c   :  { %v211_v9 = vsel %vm730_vm8, %v544_v4, %v208_v30  ;;  %v367_v12 = vsel %vm363_vm11, %v351_v49, %v366_v60  ;;  %v372_v53 = vsel %vm362_vm12, %v369_v62, %v371_v6  ;;  %v375_v13 = vsel %vm363_vm11, %v357_v44, %v374_v16 }
  0x4d   :  { %vm118_vm13 = vcmp.eq.s32.totalorder %v113_v57, 2  ;;  %497 = vcosq.f32 %v211_v9  ;;  %v294_v15 = vclz %v464_v59  ;;  %v376_v5 = vsel %vm362_vm12, %v373_v11, %v375_v13 }
  0x4e   :  { %v210_v18 = vsel %vm125_vm7, %v209_v58, %v664_v51  ;;  %499 = vsinq.f32 %v211_v9  ;;  %v761_v19 = vmul.u32.u64.low %v377_v17, %v376_v5  ;;  %v762_v20 = vmul.u32.u64.high %v377_v17, %v376_v5, %v761_v19 }
  0x4f   :  { %v465_v63 = vadd.s32 4294967294, %v294_v15  ;;  %v368_v40 = vsel %vm362_vm12, %v365_v61, %v367_v12  ;;  %v765_v28 = vmul.u32.u64.low %v377_v17, %v372_v53  ;;  %v766_v22 = vmul.u32.u64.high %v377_v17, %v372_v53, %v765_v28 }
  0x50   :  { %vm112_vm14 = vweird.f32 %v541_v3  ;;  %vm114_vm15 = vcmp.lt.s32.totalorder %v113_v57, 2  ;;  %vm115_vm0 = vcmp.eq.s32.totalorder %v113_v57, 0  ;;  %v212_v51 = vsel %vm730_vm8, 0, %v210_v18 }
  0x51   :  { %v494_v21 = vpop.eup %493  ;;  %v282_v29 = vadd.s32 %v693_v48, %v691_v43  ;;  %vm466_vm1 = vcmp.lt.s32.totalorder %v465_v63, 0  ;;  %v384_v26 = vmul.u32 %v377_v17, %v368_v40  ;;  %vm386_vm2 = vc.u32 %v762_v20, %v765_v28 }
  0x52   :  { %v496_v32 = vpop.eup %495  ;;  %v119_v25 = vxor.u32 2147483648, %v494_v21  ;;  %v297_v14 = vsel %vm466_vm1, 0, %v465_v63  ;;  %v12_v42 = vmul.f32 %v528_v0, %v528_v0  ;;  %v387_v45 = vadd.s32 1, %v766_v22 }
  0x53   :  { %v116_v27 = vxor.u32 2147483648, %v496_v32  ;;  %v298_v41 = vsub.s32 32, %v297_v14  ;;  %v299_v8 = vshll.u32 %v290_v23, %v297_v14  ;;  %v302_v33 = vsub.s32 4294967266, %v297_v14 }
  0x54   :  { %v120_v34 = vsel %vm118_vm13, %v119_v25, %v496_v32  ;;  %v216_v49 = vand.u32 3, %v212_v51  ;;  %v388_v52 = vsel %vm386_vm2, %v387_v45, %v766_v22  ;;  %vm215_vm6 = vweird.f32 %v544_v4 }
  0x55   :  { %v117_v31 = vsel %vm115_vm0, %v494_v21, %v116_v27  ;;  %v300_v48 = vshrl.u32 %v282_v29, %v298_v41  ;;  %v303_v47 = vadd.s32 127, %v302_v33  ;;  %v389_v23 = vadd.s32 %v388_v52, %v384_v26 }
  0x56   :  { %v121_v24 = vsel %vm114_vm15, %v117_v31, %v120_v34  ;;  %vm221_vm3 = vcmp.eq.s32.totalorder %v216_v49, 2  ;;  %vm218_vm4 = vcmp.eq.s32.totalorder %v216_v49, 0  ;;  %vm217_vm5 = vcmp.lt.s32.totalorder %v216_v49, 2 }
  0x57   :  { %v122_v43 = vsel %vm112_vm14, nan, %v121_v24  ;;  %v301_v54 = vor.u32 %v300_v48, %v299_v8  ;;  %v304_v36 = vshll.u32 %v303_v47, 23  ;;  %v390_v0 = vadd.s32 536870912, %v389_v23 }
  0x58   :  { %v432_v44 = vmul.f32 10.0, %v122_v43  ;;  %vm228_vm7 = vcmp.lt.s32.totalorder %v549_v7, 0  ;;  %vm791_vm8 = vcmp.le.f32.partialorder %v226_v10, 0.7853982  ;;  %v13_v12 = vmul.f32 %v533_v1, %v533_v1 }
  0x59   :  { %v305_v58 = vor.u32 4788187, %v304_v36  ;;  %v308_v38 = vcvt.s32.f32 %v301_v54  ;;  %v784_v60 = vshrl.u32 %v390_v0, 30  ;;  %v312_v5 = vsub.s32 4, %v737_v39 }
  0x5a   :  { %v436_v56 = vsub.f32 %v12_v42, %v432_v44  ;;  %v498_v57 = vpop.eup %497  ;;  %v385_v32 = vadd.s32 %v765_v28, %v762_v20  ;;  %vm318_vm13 = vweird.f32 %v549_v7  ;;  %v14_v48 = vmul.f32 %v538_v2, %v538_v2 }
  0x5b   :  { %v500_v46 = vpop.eup %499  ;;  %v222_v55 = vxor.u32 2147483648, %v498_v57  ;;  %v306_v3 = vand.u32 2147483647, %v305_v58  ;;  %v392_v16 = vshll.u32 %v784_v60, 30  ;;  %v313_v1 = vsel %vm228_vm7, %v312_v5, %v737_v39 }
  0x5c   :  { %v219_v62 = vxor.u32 2147483648, %v500_v46  ;;  %v315_v22 = vsel %vm791_vm8, 0, %v313_v1  ;;  %vm331_vm14 = vcmp.lt.s32.totalorder %v619_v50, 0  ;;  %vm330_vm15 = vcmp.le.f32.partialorder %v329_v35, 0.7853982 }
  0x5d   :  { %v223_v6 = vsel %vm221_vm3, %v222_v55, %v500_v46  ;;  %v309_v11 = vmul.f32 %v308_v38, %v306_v3  ;;  %v393_v9 = vsub.s32 %v389_v23, %v392_v16  ;;  %v319_v34 = vand.u32 3, %v315_v22 }
  0x5e   :  { %v220_v17 = vsel %vm218_vm4, %v498_v57, %v219_v62  ;;  %vm421_vm3 = vweird.f32 %v619_v50 }
  0x5f   :  { %v224_v30 = vsel %vm217_vm5, %v220_v17, %v223_v6  ;;  %v310_v61 = vxor.u32 2147483648, %v309_v11  ;;  %v395_v13 = vsub.s32 0, %v393_v9  ;;  %vm324_vm10 = vcmp.eq.s32.totalorder %v319_v34, 2 }
  0x60   :  { %v225_v4 = vsel %vm215_vm6, nan, %v224_v30  ;;  %vm321_vm11 = vcmp.eq.s32.totalorder %v319_v34, 0  ;;  %vm320_vm12 = vcmp.lt.s32.totalorder %v319_v34, 2  ;;  %v15_v6 = vmul.f32 %v612_v37, %v612_v37 }
  0x61   :  { %v311_v53 = vsel %vm228_vm7, %v310_v61, %v309_v11  ;;  %v433_v15 = vmul.f32 10.0, %v225_v4  ;;  %v468_v18 = vmin.u32 %v395_v13, %v393_v9 }
  0x62   :  { %v314_v10 = vsel %vm791_vm8, %v549_v7, %v311_v53  ;;  %v415_v7 = vsub.s32 4, %v784_v60 }
  0x63   :  { %501 = vcosq.f32 %v314_v10  ;;  %v437_v19 = vsub.f32 %v13_v12, %v433_v15  ;;  %v397_v21 = vclz %v468_v18 }
  0x64   :  { %503 = vsinq.f32 %v314_v10  ;;  %v416_v2 = vsel %vm331_vm14, %v415_v7, %v784_v60 }
  0x65   :  { %v440_v63 = vadd.f32 %v437_v19, %v436_v56  ;;  %v469_v40 = vadd.s32 4294967294, %v397_v21  ;;  %v418_v38 = vsel %vm330_vm15, 0, %v416_v2 }
  0x66   :  { %v422_v0 = vand.u32 3, %v418_v38 }
  0x67   :  { %vm470_vm9 = vcmp.lt.s32.totalorder %v469_v40, 0 }
  0x68   :  { %v400_v25 = vsel %vm470_vm9, 0, %v469_v40  ;;  %vm427_vm0 = vcmp.eq.s32.totalorder %v422_v0, 2  ;;  %vm424_vm1 = vcmp.eq.s32.totalorder %v422_v0, 0  ;;  %vm423_vm2 = vcmp.lt.s32.totalorder %v422_v0, 2 }
  0x69   :  { %v401_v27 = vsub.s32 32, %v400_v25  ;;  %v402_v51 = vshll.u32 %v393_v9, %v400_v25  ;;  %v405_v29 = vsub.s32 4294967266, %v400_v25 }
  0x6b   :  { %v403_v14 = vshrl.u32 %v385_v32, %v401_v27  ;;  %v406_v26 = vadd.s32 127, %v405_v29 }
  0x6d   :  { %v404_v31 = vor.u32 %v403_v14, %v402_v51  ;;  %v407_v41 = vshll.u32 %v406_v26, 23 }
  0x6f   :  { %v408_v42 = vor.u32 4788187, %v407_v41  ;;  %v411_v24 = vcvt.s32.f32 %v404_v31 }
  0x70   :  { %v502_v8 = vpop.eup %501 }
  0x71   :  { %v504_v39 = vpop.eup %503  ;;  %v325_v33 = vxor.u32 2147483648, %v502_v8  ;;  %v409_v28 = vand.u32 2147483647, %v408_v42 }
  0x72   :  { %v322_v45 = vxor.u32 2147483648, %v504_v39 }
  0x73   :  { %v326_v20 = vsel %vm324_vm10, %v325_v33, %v504_v39  ;;  %v412_v49 = vmul.f32 %v411_v24, %v409_v28 }
  0x74   :  { %v323_v43 = vsel %vm321_vm11, %v502_v8, %v322_v45 }
  0x75   :  { %v327_v47 = vsel %vm320_vm12, %v323_v43, %v326_v20  ;;  %v413_v44 = vxor.u32 2147483648, %v412_v49 }
  0x76   :  { %v328_v52 = vsel %vm318_vm13, nan, %v327_v47 }
  0x77   :  { %v434_v54 = vmul.f32 10.0, %v328_v52  ;;  %v414_v36 = vsel %vm331_vm14, %v413_v44, %v412_v49 }
  0x78   :  { %v417_v56 = vsel %vm330_vm15, %v619_v50, %v414_v36 }
  0x79   :  { %v438_v23 = vsub.f32 %v14_v48, %v434_v54  ;;  %505 = vcosq.f32 %v417_v56 }
  0x7a   :  { %507 = vsinq.f32 %v417_v56 }
  0x7b   :  { %v441_v58 = vadd.f32 %v440_v63, %v438_v23 }
  0x86   :  { %v506_v57 = vpop.eup %505 }
  0x87   :  { %v508_v46 = vpop.eup %507  ;;  %v428_v35 = vxor.u32 2147483648, %v506_v57 }
  0x88   :  { %v425_v55 = vxor.u32 2147483648, %v508_v46 }
  0x89   :  { %v429_v3 = vsel %vm427_vm0, %v428_v35, %v508_v46 }
  0x8a   :  { %v426_v62 = vsel %vm424_vm1, %v506_v57, %v425_v55 }
  0x8b   :  { %v430_v11 = vsel %vm423_vm2, %v426_v62, %v429_v3 }
  0x8c   :  { %v431_v16 = vsel %vm421_vm3, nan, %v430_v11 }
  0x8d   :  { %v435_v17 = vmul.f32 10.0, %v431_v16 }
  0x8f   :  { %v439_v60 = vsub.f32 %v15_v6, %v435_v17 }
  0x91   :  { %v442_v30 = vadd.f32 %v441_v58, %v439_v60 }
  0x93   :  { %v443_v59 = vrot.slane %v442_v30, 4 }
  0x95   :  { %v444_v61 = vadd.f32 %v443_v59, %v442_v30 }
  0x97   :  { %v445_v9 = vrot.slane %v444_v61, 2 }
  0x99   :  { %v446_v12 = vadd.f32 %v445_v9, %v444_v61 }
  0x9b   :  { %v447_v4 = vrot.slane %v446_v12, 1 }
  0x9d   :  { %v448_v53 = vadd.f32 %v447_v4, %v446_v12 }
  0x9f   :  { %v449_v13 = vadd.f32 320.0, %v448_v53 }
  0xa1   :  { %450 = vst [vmem:[%s826_s1] sm:$0x1] %v449_v13 }

</bundles_post_ra>
